<compile_context>
chip_gen: v7x
topology: tpu7x:2x2x1
jax: 0.10.0
libtpu: 0.0.40
codegen_flags: <defaults>
</compile_context>

<pallas_src>
import functools

import jax
import jax.numpy as jnp
from jax.experimental import pallas as pl
from jax.experimental.pallas import tpu as pltpu


F_MAX = 128      # widest hidden dim (layer-2 output); hidden lanes padded to this
NODE_PAD = 16    # node count padded to multiple of 16 (bf16 sublane packing)
GRAPH_PAD = 16   # graph count padded to multiple of 16 (bf16 sublane packing)


def _round_up(x, m):
    return ((x + m - 1) // m) * m


def _pad2d(x, rows, cols):
    return jnp.pad(x, ((0, rows - x.shape[0]), (0, cols - x.shape[1])))


# ---------------------------------------------------------------------------
# Fused Pallas kernel: one invocation, all 4 layers unrolled, epilogue fused
# ---------------------------------------------------------------------------

def _fused_gnn_kernel(*refs, num_layers, num_classes):
    """No grid -> single invocation; all refs are whole arrays resident in VMEM.

    refs layout:
      a_ref : [n_pad, n_pad]   bf16  normalized adjacency
      x_ref : [n_pad, f_in]    bf16  node features (natural K, no 16->128 pad)
      w_refs: num_layers refs, bf16, (f_in, F_MAX) for layer 0, (F_MAX, F_MAX) after
      b_refs: num_layers refs, f32,  (1, F_MAX)
      p_ref : [g_pad, n_pad]   bf16  mean-pooling matrix
      o_ref : [g_pad, F_MAX]   f32   output log-probs
    """
    a_ref, x_ref = refs[0], refs[1]
    w_refs = refs[2:2 + num_layers]
    b_refs = refs[2 + num_layers:2 + 2 * num_layers]
    p_ref = refs[2 + 2 * num_layers]
    o_ref = refs[2 + 2 * num_layers + 1]

    a = a_ref[...]                       # bf16, VMEM-resident, reused every layer
    h = x_ref[...]                       # bf16 activation carried in values/vregs

    # ---- 4 unrolled GCN layers: A_hat @ (H @ W) + b, ReLU except last ----------
    for l in range(num_layers):
        # H @ W_l : bf16 operands on the MXU, f32 accumulation; stays in vregs.
        xw = jnp.dot(h, w_refs[l][...], preferred_element_type=jnp.float32)
        # A_hat @ (H W_l) + b_l : f32 accumulation, f32 elementwise bias add.
        h_f32 = jnp.dot(a, xw.astype(jnp.bfloat16),
                        preferred_element_type=jnp.float32) + b_refs[l][...]
        if l < num_layers - 1:
            h_f32 = jnp.maximum(h_f32, 0.0)   # ReLU (dropout == identity in eval)
        h = h_f32.astype(jnp.bfloat16)        # single cast per layer

    # ---- epilogue: global_mean_pool + masked log_softmax (f32) -----------------
    pooled = jnp.dot(p_ref[...], h, preferred_element_type=jnp.float32)  # [g_pad, F_MAX]
    col = jax.lax.broadcasted_iota(jnp.int32, pooled.shape, 1)
    mask = col < num_classes
    masked = jnp.where(mask, pooled, -jnp.inf)
    m = jnp.max(masked, axis=1, keepdims=True)
    e = jnp.where(mask, jnp.exp(pooled - m), 0.0)
    s = jnp.sum(e, axis=1, keepdims=True)
    # masked store: padded class columns get 0, not garbage
    o_ref[...] = jnp.where(mask, pooled - m - jnp.log(s), 0.0)


# ---------------------------------------------------------------------------
# Glue: adjacency, padding, parameter init, forward pass
# ---------------------------------------------------------------------------

def build_normalized_adjacency(edge_index, num_nodes):
    """A_hat = D^-1/2 (A + I) D^-1/2, A[dst, src] += 1 (PyG message direction,
    duplicate edges accumulate)."""
    src, dst = edge_index[0], edge_index[1]
    a = jnp.zeros((num_nodes, num_nodes), jnp.float32).at[dst, src].add(1.0)
    a = a + jnp.eye(num_nodes, dtype=jnp.float32)          # self loops
    deg = jnp.sum(a, axis=1)
    d_inv_sqrt = 1.0 / jnp.sqrt(jnp.maximum(deg, 1e-12))
    return d_inv_sqrt[:, None] * a * d_inv_sqrt[None, :]


def init_params(key, num_node_features, num_classes):
    dims = [(num_node_features, 64), (64, 128), (128, 64), (64, num_classes)]
    params = []
    for fin, fout in dims:
        kw, key = jax.random.split(key)
        scale = jnp.sqrt(2.0 / (fin + fout))
        w = scale * jax.random.normal(kw, (fin, fout), jnp.float32)
        b = jnp.zeros((fout,), jnp.float32)
        params.append((w, b))
    return params


def enhanced_gnn_forward(x, edge_index, batch, params, num_classes, num_graphs):
    n, f_in = x.shape
    n_pad = _round_up(n, NODE_PAD)
    g_pad = _round_up(num_graphs, GRAPH_PAD)
    num_layers = len(params)

    # Dense symmetric-normalized adjacency in bf16 (halves the dominant N^2 bytes).
    a_hat = build_normalized_adjacency(edge_index, n)
    a_hat_p = _pad2d(a_hat, n_pad, n_pad).astype(jnp.bfloat16)

    # Node features: nodes padded, contracting dim kept at f_in (no 16->128 K pad).
    x_p = _pad2d(x.astype(jnp.float32), n_pad, f_in).astype(jnp.bfloat16)

    # Weights: layer 0 keeps natural input dim; all output dims padded to F_MAX.
    w_padded = []
    b_padded = []
    for i, (w, b) in enumerate(params):
        in_dim = f_in if i == 0 else F_MAX
        w_padded.append(_pad2d(w, in_dim, F_MAX).astype(jnp.bfloat16))
        b_padded.append(_pad2d(b[None, :], 1, F_MAX))        # f32 (1, F_MAX)

    # Mean-pooling matrix P[g, i] = 1/|graph g| for node i in graph g (pads -> 0).
    one_hot = (batch[None, :] == jnp.arange(g_pad)[:, None]).astype(jnp.float32)
    one_hot = jnp.pad(one_hot, ((0, 0), (0, n_pad - n)))
    counts = jnp.maximum(jnp.sum(one_hot, axis=1, keepdims=True), 1.0)
    p_mat = (one_hot / counts).astype(jnp.bfloat16)

    kernel = functools.partial(_fused_gnn_kernel,
                               num_layers=num_layers, num_classes=num_classes)

    # No grid: one invocation, whole (tiny) arrays resident in VMEM, layers unrolled
    # in the kernel body. No pipeline machinery, no per-step overhead.
    out = pl.pallas_call(
        kernel,
        out_shape=jax.ShapeDtypeStruct((g_pad, F_MAX), jnp.float32),
        compiler_params=pltpu.CompilerParams(
            # Actual requirement is well under 1 MiB; keep the limit small so it is
            # safe on every generation (v7x physical VMEM is only 64 MiB per TC).
            vmem_limit_bytes=4 * 1024 * 1024,
        ),
    )(a_hat_p, x_p, *w_padded, *b_padded, p_mat)

    return out[:num_graphs, :num_classes]


# ---------------------------------------------------------------------------
# Pure-JAX f32 reference (matches the PyTorch module semantics, eval mode)
# ---------------------------------------------------------------------------

def reference_forward(x, edge_index, batch, params, num_classes, num_graphs):
    a_hat = build_normalized_adjacency(edge_index, x.shape[0])
    h = x.astype(jnp.float32)
    for i, (w, b) in enumerate(params):
        h = a_hat @ (h @ w) + b[None, :]
        if i < len(params) - 1:
            h = jnp.maximum(h, 0.0)
    one_hot = (batch[None, :] == jnp.arange(num_graphs)[:, None]).astype(jnp.float32)
    pooled = (one_hot @ h) / jnp.maximum(one_hot.sum(axis=1, keepdims=True), 1.0)
    return jax.nn.log_softmax(pooled, axis=1)


# ---------------------------------------------------------------------------
# Main
# ---------------------------------------------------------------------------

if __name__ == "__main__":
    key = jax.random.PRNGKey(0)

    NUM_NODE_FEATURES = 16
    NUM_CLASSES = 8
    NODES_PER_GRAPH = 16
    NUM_GRAPHS = 2
    N = NODES_PER_GRAPH * NUM_GRAPHS  # 32

    # Deterministic node features.
    kx, key = jax.random.split(key)
    x = jax.random.normal(kx, (N, NUM_NODE_FEATURES), jnp.float32)

    # Deterministic graph structure: a ring within each graph (undirected edges).
    srcs, dsts = [], []
    for g in range(NUM_GRAPHS):
        base = g * NODES_PER_GRAPH
        for i in range(NODES_PER_GRAPH):
            u = base + i
            v = base + (i + 1) % NODES_PER_GRAPH
            srcs += [u, v]
            dsts += [v, u]
    edge_index = jnp.array([srcs, dsts], dtype=jnp.int32)   # [2, 64]

    batch = jnp.repeat(jnp.arange(NUM_GRAPHS, dtype=jnp.int32), NODES_PER_GRAPH)

    params = init_params(key, NUM_NODE_FEATURES, NUM_CLASSES)

    out = enhanced_gnn_forward(x, edge_index, batch, params, NUM_CLASSES, NUM_GRAPHS)
    out = jax.block_until_ready(out)

    ref = reference_forward(x, edge_index, batch, params, NUM_CLASSES, NUM_GRAPHS)
    ref = jax.block_until_ready(ref)

    assert out.shape == (NUM_GRAPHS, NUM_CLASSES), out.shape
    # bf16 MXU operands (f32 accumulation) vs a pure-f32 reference -> loosened tol.
    max_err = float(jnp.max(jnp.abs(out - ref)))
    assert jnp.allclose(out, ref, atol=5e-2, rtol=5e-2), (
        f"Pallas output does not match reference (max abs err = {max_err})")

    print("KERNEL_OK")
</pallas_src>

<mosaic_0001>
module attributes {stable_mosaic.version = 11 : i64} {
  func.func @_fused_gnn_kernel(%arg0: memref<32x32xbf16, #tpu.memory_space<vmem>>, %arg1: memref<32x16xbf16, #tpu.memory_space<vmem>>, %arg2: memref<16x128xbf16, #tpu.memory_space<vmem>>, %arg3: memref<128x128xbf16, #tpu.memory_space<vmem>>, %arg4: memref<128x128xbf16, #tpu.memory_space<vmem>>, %arg5: memref<128x128xbf16, #tpu.memory_space<vmem>>, %arg6: memref<1x128xf32, #tpu.memory_space<vmem>>, %arg7: memref<1x128xf32, #tpu.memory_space<vmem>>, %arg8: memref<1x128xf32, #tpu.memory_space<vmem>>, %arg9: memref<1x128xf32, #tpu.memory_space<vmem>>, %arg10: memref<16x32xbf16, #tpu.memory_space<vmem>>, %arg11: memref<16x128xf32, #tpu.memory_space<vmem>>) attributes {dimension_semantics = [], scalar_prefetch = 0 : i64, scratch_operands = 0 : i64, tpu.core_type = #tpu.core_type<tc>} {
    %c0 = arith.constant 0 : index
    %c0_0 = arith.constant 0 : index
    %0 = vector.load %arg0[%c0, %c0_0] : memref<32x32xbf16, #tpu.memory_space<vmem>>, vector<32x32xbf16>
    %c0_1 = arith.constant 0 : index
    %c0_2 = arith.constant 0 : index
    %1 = vector.load %arg1[%c0_1, %c0_2] : memref<32x16xbf16, #tpu.memory_space<vmem>>, vector<32x16xbf16>
    %c0_3 = arith.constant 0 : index
    %c0_4 = arith.constant 0 : index
    %2 = vector.load %arg2[%c0_3, %c0_4] : memref<16x128xbf16, #tpu.memory_space<vmem>>, vector<16x128xbf16>
    %cst = arith.constant dense<0.000000e+00> : vector<32x128xf32>
    %3 = tpu.matmul %1, %2, %cst {dimension_numbers = #tpu.dot_dimension_numbers<[1], [0], [0], [1], [0, 0, 1, 1], [], []>} : vector<32x16xbf16>, vector<16x128xbf16>, vector<32x128xf32> -> vector<32x128xf32>
    %4 = arith.truncf %3 : vector<32x128xf32> to vector<32x128xbf16>
    %cst_5 = arith.constant dense<0.000000e+00> : vector<32x128xf32>
    %5 = tpu.matmul %0, %4, %cst_5 {dimension_numbers = #tpu.dot_dimension_numbers<[1], [0], [0], [1], [0, 0, 1, 1], [], []>} : vector<32x32xbf16>, vector<32x128xbf16>, vector<32x128xf32> -> vector<32x128xf32>
    %c0_6 = arith.constant 0 : index
    %c0_7 = arith.constant 0 : index
    %6 = vector.load %arg6[%c0_6, %c0_7] : memref<1x128xf32, #tpu.memory_space<vmem>>, vector<1x128xf32>
    %7 = vector.broadcast %6 : vector<1x128xf32> to vector<32x128xf32>
    %8 = arith.addf %5, %7 : vector<32x128xf32>
    %cst_8 = arith.constant 0.000000e+00 : f32
    %9 = vector.broadcast %cst_8 : f32 to vector<32x128xf32>
    %10 = arith.maximumf %8, %9 : vector<32x128xf32>
    %11 = arith.truncf %10 : vector<32x128xf32> to vector<32x128xbf16>
    %c0_9 = arith.constant 0 : index
    %c0_10 = arith.constant 0 : index
    %12 = vector.load %arg3[%c0_9, %c0_10] : memref<128x128xbf16, #tpu.memory_space<vmem>>, vector<128x128xbf16>
    %cst_11 = arith.constant dense<0.000000e+00> : vector<32x128xf32>
    %13 = tpu.matmul %11, %12, %cst_11 {dimension_numbers = #tpu.dot_dimension_numbers<[1], [0], [0], [1], [0, 0, 1, 1], [], []>} : vector<32x128xbf16>, vector<128x128xbf16>, vector<32x128xf32> -> vector<32x128xf32>
    %14 = arith.truncf %13 : vector<32x128xf32> to vector<32x128xbf16>
    %cst_12 = arith.constant dense<0.000000e+00> : vector<32x128xf32>
    %15 = tpu.matmul %0, %14, %cst_12 {dimension_numbers = #tpu.dot_dimension_numbers<[1], [0], [0], [1], [0, 0, 1, 1], [], []>} : vector<32x32xbf16>, vector<32x128xbf16>, vector<32x128xf32> -> vector<32x128xf32>
    %c0_13 = arith.constant 0 : index
    %c0_14 = arith.constant 0 : index
    %16 = vector.load %arg7[%c0_13, %c0_14] : memref<1x128xf32, #tpu.memory_space<vmem>>, vector<1x128xf32>
    %17 = vector.broadcast %16 : vector<1x128xf32> to vector<32x128xf32>
    %18 = arith.addf %15, %17 : vector<32x128xf32>
    %cst_15 = arith.constant 0.000000e+00 : f32
    %19 = vector.broadcast %cst_15 : f32 to vector<32x128xf32>
    %20 = arith.maximumf %18, %19 : vector<32x128xf32>
    %21 = arith.truncf %20 : vector<32x128xf32> to vector<32x128xbf16>
    %c0_16 = arith.constant 0 : index
    %c0_17 = arith.constant 0 : index
    %22 = vector.load %arg4[%c0_16, %c0_17] : memref<128x128xbf16, #tpu.memory_space<vmem>>, vector<128x128xbf16>
    %cst_18 = arith.constant dense<0.000000e+00> : vector<32x128xf32>
    %23 = tpu.matmul %21, %22, %cst_18 {dimension_numbers = #tpu.dot_dimension_numbers<[1], [0], [0], [1], [0, 0, 1, 1], [], []>} : vector<32x128xbf16>, vector<128x128xbf16>, vector<32x128xf32> -> vector<32x128xf32>
    %24 = arith.truncf %23 : vector<32x128xf32> to vector<32x128xbf16>
    %cst_19 = arith.constant dense<0.000000e+00> : vector<32x128xf32>
    %25 = tpu.matmul %0, %24, %cst_19 {dimension_numbers = #tpu.dot_dimension_numbers<[1], [0], [0], [1], [0, 0, 1, 1], [], []>} : vector<32x32xbf16>, vector<32x128xbf16>, vector<32x128xf32> -> vector<32x128xf32>
    %c0_20 = arith.constant 0 : index
    %c0_21 = arith.constant 0 : index
    %26 = vector.load %arg8[%c0_20, %c0_21] : memref<1x128xf32, #tpu.memory_space<vmem>>, vector<1x128xf32>
    %27 = vector.broadcast %26 : vector<1x128xf32> to vector<32x128xf32>
    %28 = arith.addf %25, %27 : vector<32x128xf32>
    %cst_22 = arith.constant 0.000000e+00 : f32
    %29 = vector.broadcast %cst_22 : f32 to vector<32x128xf32>
    %30 = arith.maximumf %28, %29 : vector<32x128xf32>
    %31 = arith.truncf %30 : vector<32x128xf32> to vector<32x128xbf16>
    %c0_23 = arith.constant 0 : index
    %c0_24 = arith.constant 0 : index
    %32 = vector.load %arg5[%c0_23, %c0_24] : memref<128x128xbf16, #tpu.memory_space<vmem>>, vector<128x128xbf16>
    %cst_25 = arith.constant dense<0.000000e+00> : vector<32x128xf32>
    %33 = tpu.matmul %31, %32, %cst_25 {dimension_numbers = #tpu.dot_dimension_numbers<[1], [0], [0], [1], [0, 0, 1, 1], [], []>} : vector<32x128xbf16>, vector<128x128xbf16>, vector<32x128xf32> -> vector<32x128xf32>
    %34 = arith.truncf %33 : vector<32x128xf32> to vector<32x128xbf16>
    %cst_26 = arith.constant dense<0.000000e+00> : vector<32x128xf32>
    %35 = tpu.matmul %0, %34, %cst_26 {dimension_numbers = #tpu.dot_dimension_numbers<[1], [0], [0], [1], [0, 0, 1, 1], [], []>} : vector<32x32xbf16>, vector<32x128xbf16>, vector<32x128xf32> -> vector<32x128xf32>
    %c0_27 = arith.constant 0 : index
    %c0_28 = arith.constant 0 : index
    %36 = vector.load %arg9[%c0_27, %c0_28] : memref<1x128xf32, #tpu.memory_space<vmem>>, vector<1x128xf32>
    %37 = vector.broadcast %36 : vector<1x128xf32> to vector<32x128xf32>
    %38 = arith.addf %35, %37 : vector<32x128xf32>
    %39 = arith.truncf %38 : vector<32x128xf32> to vector<32x128xbf16>
    %c0_29 = arith.constant 0 : index
    %c0_30 = arith.constant 0 : index
    %40 = vector.load %arg10[%c0_29, %c0_30] : memref<16x32xbf16, #tpu.memory_space<vmem>>, vector<16x32xbf16>
    %cst_31 = arith.constant dense<0.000000e+00> : vector<16x128xf32>
    %41 = tpu.matmul %40, %39, %cst_31 {dimension_numbers = #tpu.dot_dimension_numbers<[1], [0], [0], [1], [0, 0, 1, 1], [], []>} : vector<16x32xbf16>, vector<32x128xbf16>, vector<16x128xf32> -> vector<16x128xf32>
    %42 = tpu.iota {dimensions = array<i32: 1>} : vector<16x128xi32>
    %c8_i32 = arith.constant 8 : i32
    %43 = vector.broadcast %c8_i32 : i32 to vector<16x128xi32>
    %44 = arith.cmpi slt, %42, %43 : vector<16x128xi32>
    %cst_32 = arith.constant 0xFF800000 : f32
    %45 = vector.broadcast %cst_32 : f32 to vector<16x128xf32>
    %46 = arith.select %44, %41, %45 : vector<16x128xi1>, vector<16x128xf32>
    %cst_33 = arith.constant dense<0xFF800000> : vector<16xf32>
    %47 = vector.multi_reduction <maximumf>, %46, %cst_33 [1] : vector<16x128xf32> to vector<16xf32>
    %48 = vector.shape_cast %47 : vector<16xf32> to vector<16x1xf32>
    %49 = vector.broadcast %48 : vector<16x1xf32> to vector<16x128xf32>
    %50 = arith.subf %41, %49 : vector<16x128xf32>
    %51 = math.exp %50 : vector<16x128xf32>
    %cst_34 = arith.constant 0.000000e+00 : f32
    %52 = vector.broadcast %cst_34 : f32 to vector<16x128xf32>
    %53 = arith.select %44, %51, %52 : vector<16x128xi1>, vector<16x128xf32>
    %cst_35 = arith.constant dense<0.000000e+00> : vector<16xf32>
    %54 = vector.multi_reduction <add>, %53, %cst_35 [1] : vector<16x128xf32> to vector<16xf32>
    %55 = vector.shape_cast %54 : vector<16xf32> to vector<16x1xf32>
    %56 = vector.broadcast %48 : vector<16x1xf32> to vector<16x128xf32>
    %57 = arith.subf %41, %56 : vector<16x128xf32>
    %58 = math.log %55 : vector<16x1xf32>
    %59 = vector.broadcast %58 : vector<16x1xf32> to vector<16x128xf32>
    %60 = arith.subf %57, %59 : vector<16x128xf32>
    %cst_36 = arith.constant 0.000000e+00 : f32
    %61 = vector.broadcast %cst_36 : f32 to vector<16x128xf32>
    %62 = arith.select %44, %60, %61 : vector<16x128xi1>, vector<16x128xf32>
    %c0_37 = arith.constant 0 : index
    %c0_38 = arith.constant 0 : index
    %63 = vector.load %arg11[%c0_37, %c0_38] : memref<16x128xf32, #tpu.memory_space<vmem>>, vector<16x128xf32>
    tpu.vector_store %arg11[%c0_37, %c0_38], %62 {strides = array<i32>} : memref<16x128xf32, #tpu.memory_space<vmem>>, vector<16x128xf32>,
    return
  }
}

</mosaic_0001>

<bundles_post_ra>
// kernel: tpu_custom_call.1
= control target key start
LH: loop header
LB: loop body
LE: loop exit
PB: predicated region body
PF: predicated region fallthrough
CT: control target
= control target key end

     0   :  { %16 = vsyncpa [#allocation3], 0  ;;  %s1407_s0 = inlined_call_operand.vmem [shape: bf16[32,32], index: 0, kind: input, shape index: {}]   ;;  %s1408_s1 = inlined_call_operand.vmem [shape: bf16[32,16], index: 1, kind: input, shape index: {}]   ;;  %s1409_s2 = inlined_call_operand.vmem [shape: bf16[16,128], index: 2, kind: input, shape index: {}]   ;;  %s1410_s3 = inlined_call_operand.hbm [shape: bf16[128,128], index: 3, kind: input, shape index: {}]   ;;  %s1411_s4 = inlined_call_operand.hbm [shape: bf16[128,128], index: 4, kind: input, shape index: {}]   ;;  %s1412_s5 = inlined_call_operand.hbm [shape: bf16[128,128], index: 5, kind: input, shape index: {}]   ;;  %s1413_s6 = inlined_call_operand.vmem [shape: f32[1,128], index: 6, kind: input, shape index: {}]   ;;  %s1414_s7 = inlined_call_operand.vmem [shape: f32[1,128], index: 7, kind: input, shape index: {}]   ;;  %s1415_s8 = inlined_call_operand.vmem [shape: f32[1,128], index: 8, kind: input, shape index: {}]   ;;  %s1416_s9 = inlined_call_operand.vmem [shape: f32[1,128], index: 9, kind: input, shape index: {}]   ;;  %s1417_s10 = inlined_call_operand.vmem [shape: bf16[16,32], index: 10, kind: input, shape index: {}]   ;;  %s1418_s11 = inlined_call_operand.hbm [shape: f32[16,128], index: 11, kind: output, shape index: {}]  }
   0x1   :  { %17 = vsyncpa [#allocation6], 0 }
   0x2   :  { %18 = vsyncpa [#allocation4], 0  ;;  %s1216_s17 = smov [#allocation5]   ;;  %s1217_s19 = smov [#allocation2]  }
   0x3   :  { %s42_s18 = sshll.u32 %s1216_s17, 4  ;;  %s30_s20 = sshll.u32 %s1217_s19, 4  ;;  %s43_s18 = int_to_ptr.vmem [resolvable:$true] %s42_s18  ;;  %s1286_s20 = int_to_ptr.vmem [resolvable:$true] %s30_s20 }
   0x4   :  { %s1122_s23 = scalar_lea.hbm %s1411_s4, 1024 }
   0x5   :  { %p1123_p0 = scmp.ne.s32.totalorder %s1411_s4, %s1122_s23  ;;  %p1126_p1 = scmp.lt.u32.totalorder %s1122_s23, %s1411_s4 }
   0x7   :  { %p1128_p2 = pnand %p1126_p1, %p1123_p0 }
   0x9   :  { %1131 = shalt.err (!%p1128_p2)
}
   0xa   :  { %s1132_s28 = scalar_lea.vmem %s43_s18, 1024  ;;  %p1137_p4 = scmp.lt.s32.totalorder %s43_s18, %s43_s18 }
   0xb   :  { %p1133_p3 = scmp.ne.s32.totalorder %s43_s18, %s1132_s28  ;;  %p1138_p5 = scmp.lt.s32.totalorder %s1132_s28, %s1132_s28 }
   0xd   :  { %p1139_p6 = por %p1138_p5, %p1137_p4 }
   0xf   :  { %p1140_p7 = pnand %p1139_p6, %p1133_p3 }
  0x11   :  { %1143 = shalt.err (!%p1140_p7)
}
  0x12   :  { %s1218_s29 = smov 64   ;;  %s1219_s30 = smov 4  }
  0x13   :  { %48 = dma.hbm_to_vmem [thread:$0]  %s1411_s4, 1024, %s43_s18, [#allocation6], %s1218_s29, %s1218_s29, %s1219_s30  }
  0x14   :  { %s1144_s16 = scalar_lea.hbm %s1410_s3, 1024 }
  0x15   :  { %p1145_p8 = scmp.ne.s32.totalorder %s1410_s3, %s1144_s16  ;;  %p1148_p9 = scmp.lt.u32.totalorder %s1144_s16, %s1410_s3 }
  0x17   :  { %p1150_p10 = pnand %p1148_p9, %p1145_p8 }
  0x19   :  { %1153 = shalt.err (!%p1150_p10)
}
  0x1a   :  { %s1154_s23 = scalar_lea.vmem %s1286_s20, 1024  ;;  %p1159_p12 = scmp.lt.s32.totalorder %s1286_s20, %s1286_s20 }
  0x1b   :  { %p1155_p11 = scmp.ne.s32.totalorder %s1286_s20, %s1154_s23  ;;  %p1160_p13 = scmp.lt.s32.totalorder %s1154_s23, %s1154_s23 }
  0x1d   :  { %p1161_p0 = por %p1160_p13, %p1159_p12 }
  0x1f   :  { %p1162_p1 = pnand %p1161_p0, %p1155_p11 }
  0x21   :  { %1165 = shalt.err (!%p1162_p1)
}
  0x22   :  { %36 = dma.hbm_to_vmem [thread:$0]  %s1410_s3, 1024, %s1286_s20, [#allocation3], %s1218_s29, %s1218_s29, %s1219_s30  }
  0x23   :  { %s1220_s24 = smov [#allocation7]   ;;  %s1166_s28 = scalar_lea.hbm %s1412_s5, 1024 }
  0x24   :  { %s54_s25 = sshll.u32 %s1220_s24, 4  ;;  %p1167_p2 = scmp.ne.s32.totalorder %s1412_s5, %s1166_s28  ;;  %s55_s25 = int_to_ptr.vmem [resolvable:$true] %s54_s25 }
  0x25   :  { %p1170_p3 = scmp.lt.u32.totalorder %s1166_s28, %s1412_s5 }
  0x27   :  { %p1172_p4 = pnand %p1170_p3, %p1167_p2 }
  0x29   :  { %1175 = shalt.err (!%p1172_p4)
}
  0x2a   :  { %s1176_s16 = scalar_lea.vmem %s55_s25, 1024  ;;  %p1181_p6 = scmp.lt.s32.totalorder %s55_s25, %s55_s25 }
  0x2b   :  { %p1177_p5 = scmp.ne.s32.totalorder %s55_s25, %s1176_s16  ;;  %p1182_p7 = scmp.lt.s32.totalorder %s1176_s16, %s1176_s16 }
  0x2d   :  { %p1183_p8 = por %p1182_p7, %p1181_p6 }
  0x2f   :  { %p1184_p9 = pnand %p1183_p8, %p1177_p5 }
  0x31   :  { %1187 = shalt.err (!%p1184_p9)
}
  0x32   :  { %60 = dma.hbm_to_vmem [thread:$0]  %s1412_s5, 1024, %s55_s25, [#allocation6], %s1218_s29, %s1218_s29, %s1219_s30  }
  0x33   :  { %1210 = dma.done.wait [#allocation3], 1024  }
  0x34   :  { %1211 = vsyncadd [#allocation3], 4294966272 }
  0x35   :  { %1212 = dma.done.wait [#allocation6], 2048  }
  0x36   :  { %1213 = vsyncadd [#allocation6], 4294965248  ;;  %v1084_v0 = vld [vmem:[%s1409_s2] sm:$0xff]   ;;  %vm107_vm0 = vcmask 130048   ;;  %v1086_v2 = vld [vmem:[%s1408_s1 + $0x8] sm:$0xff]   ;;  %vm182_vm1 = vcmask 261120  }
  0x37   :  { %v1085_v1 = vld [vmem:[%s1408_s1] sm:$0xff]   ;;  %968 = vmatprep.subr.bf16.mxu1 %v1084_v0  ;;  %v1090_v5 = vld [vmem:[#allocation2 + $0x8] sm:$0xff]   ;;  %v1091_v6 = vld [vmem:[#allocation2 + $0x10] sm:$0xff]   ;;  %vm1222_vm2 = vmmov 0  }
  0x38   :  { %969 = vmatpush3.bf16.msra.mxu1 %v1084_v0  ;;  %970 = vmatprep.mubr.msk.bf16.mxu1 %vm107_vm0, %v1085_v1  ;;  %v1350_v3 = vld [vmem:[%s1407_s0] sm:$0xff]   ;;  %v1092_v7 = vld [vmem:[#allocation2 + $0x18] sm:$0xff]   ;;  %v1094_v9 = vld [vmem:[#allocation2 + $0x28] sm:$0xff]  }
  0x39   :  { %v1089_v4 = vld [vmem:[#allocation2] sm:$0xff]   ;;  %v1357_v16 = vld [vmem:[%s1407_s0 + $0x8] sm:$0xff]   ;;  %v1095_v17 = vld [vmem:[#allocation2 + $0x30] sm:$0xff]  }
  0x3a   :  { %982 = vmatprep.subr.bf16.mxu0 %v1089_v4  ;;  %v1093_v8 = vld [vmem:[#allocation2 + $0x20] sm:$0xff]   ;;  %v1096_v18 = vld [vmem:[#allocation2 + $0x38] sm:$0xff]   ;;  %v1098_v41 = vld [vmem:[#allocation5 + $0x8] sm:$0xff]  }
  0x3b   :  { %971 = vmatmul.mubr.msk.bf16.vlgmr.msra.gmra.mrb[0].mxu1 %vm107_vm0, %v1086_v2  ;;  %983 = vmatpush3.bf16.msra.mxu0 %v1089_v4  ;;  %v876_v19 = vld [vmem:[%s1413_s6] ss:$0 sm:$0xff]  ;;  %v1099_v42 = vld [vmem:[#allocation5 + $0x10] sm:$0xff]   ;;  %v1100_v43 = vld [vmem:[#allocation5 + $0x18] sm:$0xff]  }
  0x3c   :  { %978 = vmatprep.mubr.msk.bf16.mxu1 %vm182_vm1, %v1350_v3  ;;  %984 = vmatprep.subr.bf16.mxu0 %v1090_v5  ;;  %v1097_v40 = vld [vmem:[#allocation5] sm:$0xff]   ;;  %v1102_v45 = vld [vmem:[#allocation5 + $0x28] sm:$0xff]   ;;  %v1103_v46 = vld [vmem:[#allocation5 + $0x30] sm:$0xff]  }
  0x3d   :  { %v1101_v44 = vld [vmem:[#allocation5 + $0x20] sm:$0xff]   ;;  %v1104_v47 = vld [vmem:[#allocation5 + $0x38] sm:$0xff]  }
  0x3e   :  { %v889_v48 = vld [vmem:[%s1414_s7] ss:$0 sm:$0xff] }
  0x3f   :  { %985 = vmatpush3.bf16.msra.mxu0 %v1090_v5 }
  0x40   :  { %986 = vmatprep.subr.bf16.mxu0 %v1091_v6 }
  0x43   :  { %987 = vmatpush3.bf16.msra.mxu0 %v1091_v6  ;;  %v1105_v6 = vld [vmem:[#allocation7] sm:$0xff]  }
  0x44   :  { %988 = vmatprep.subr.bf16.mxu0 %v1092_v7 }
  0x47   :  { %989 = vmatpush3.bf16.msra.mxu0 %v1092_v7  ;;  %v1106_v7 = vld [vmem:[#allocation7 + $0x8] sm:$0xff]  }
  0x48   :  { %990 = vmatprep.subr.bf16.mxu0 %v1093_v8 }
  0x4b   :  { %991 = vmatpush3.bf16.msra.mxu0 %v1093_v8  ;;  %v1107_v8 = vld [vmem:[#allocation7 + $0x10] sm:$0xff]  }
  0x4c   :  { %992 = vmatprep.subr.bf16.mxu0 %v1094_v9 }
  0x4f   :  { %993 = vmatpush3.bf16.msra.mxu0 %v1094_v9  ;;  %v1109_v9 = vld [vmem:[#allocation7 + $0x20] sm:$0xff]  }
  0x50   :  { %994 = vmatprep.subr.bf16.mxu0 %v1095_v17 }
  0x53   :  { %995 = vmatpush3.bf16.msra.mxu0 %v1095_v17 }
  0x54   :  { %996 = vmatprep.subr.bf16.mxu0 %v1096_v18 }
  0x57   :  { %997 = vmatpush3.bf16.msra.mxu0 %v1096_v18 }
 0x10e   :  { %v972_v10 = vpop.f32.mrb[0].mxu1 }
 0x10f   :  { %v148_v11 = vpop.f32.mrb[1].mxu1 }
 0x110   :  { %v973_v12 = vpop.f32.mrb[2].mxu1 }
 0x111   :  { %v164_v13 = vpack.c.bf16 %v973_v12, %v972_v10  ;;  %v151_v14 = vpop.f32.mrb[3].mxu1  ;;  %v1110_v10 = vld [vmem:[#allocation7 + $0x28] sm:$0xff]   ;;  %v1112_v12 = vld [vmem:[#allocation7 + $0x38] sm:$0xff]  }
 0x112   :  { %v163_v15 = vpack.c.bf16 %v151_v14, %v148_v11  ;;  %v1111_v11 = vld [vmem:[#allocation7 + $0x30] sm:$0xff]  }
 0x114   :  { %974 = vmatprep.subr.bf16.mxu1 %v163_v15 }
 0x115   :  { %975 = vmatpush3.bf16.msra.mxu1 %v163_v15 }
 0x116   :  { %976 = vmatprep.subr.bf16.mxu1 %v164_v13 }
 0x119   :  { %977 = vmatpush3.bf16.msra.mxu1 %v164_v13  ;;  %v900_v13 = vld [vmem:[%s1415_s8] ss:$0 sm:$0xff] }
 0x11c   :  { %979 = vmatmul.mubr.msk.bf16.vlgmr.msra.gmra.mrb[4].mxu1 %vm182_vm1, %v1357_v16 }
 0x11d   :  { %1006 = vmatprep.mubr.msk.bf16.mxu1 %vm182_vm1, %v1350_v3 }
 0x1ef   :  { %v980_v20 = vpop.f32.mrb[4].mxu1 }
 0x1f0   :  { %v232_v21 = vadd.f32 %v980_v20, %v876_v19  ;;  %v223_v22 = vpop.f32.mrb[5].mxu1 }
 0x1f1   :  { %v224_v23 = vadd.f32 %v876_v19, %v223_v22  ;;  %v981_v24 = vpop.f32.mrb[6].mxu1 }
 0x1f2   :  { %v235_v25 = vadd.f32 %v981_v24, %v876_v19  ;;  %v226_v26 = vpop.f32.mrb[7].mxu1  ;;  %v240_v28 = vmax.f32 %v232_v21, 0.0 }
 0x1f3   :  { %v227_v27 = vadd.f32 %v876_v19, %v226_v26  ;;  %v238_v30 = vmax.f32 %v224_v23, 0.0 }
 0x1f4   :  { %v241_v29 = vmax.f32 %v235_v25, 0.0 }
 0x1f5   :  { %v239_v31 = vmax.f32 %v227_v27, 0.0 }
 0x1f6   :  { %v243_v32 = vpack.c.bf16 %v241_v29, %v240_v28 }
 0x1f7   :  { %v242_v33 = vpack.c.bf16 %v239_v31, %v238_v30 }
 0x1f9   :  { %998 = vmatprep.mubr.bf16.mxu0 %v242_v33 }
 0x1fa   :  { %999 = vmatmul.mubr.bf16.vlgmr.msra.gmra.mrb[0].mxu0 %v243_v32 }
 0x1fb   :  { %1034 = vmatprep.mubr.msk.bf16.mxu0 %vm182_vm1, %v1350_v3 }
 0x2cd   :  { %v1000_v34 = vpop.f32.mrb[0].mxu0 }
 0x2ce   :  { %v342_v35 = vpop.f32.mrb[1].mxu0 }
 0x2cf   :  { %v1001_v36 = vpop.f32.mrb[2].mxu0 }
 0x2d0   :  { %v358_v37 = vpack.c.bf16 %v1001_v36, %v1000_v34  ;;  %v345_v38 = vpop.f32.mrb[3].mxu0 }
 0x2d1   :  { %v357_v39 = vpack.c.bf16 %v345_v38, %v342_v35  ;;  %v1221_v35 = vmov 0.0  }
 0x2d3   :  { %1002 = vmatprep.subr.bf16.mxu1 %v357_v39 }
 0x2d4   :  { %1003 = vmatpush3.bf16.msra.mxu1 %v357_v39 }
 0x2d5   :  { %1004 = vmatprep.subr.bf16.mxu1 %v358_v37 }
 0x2d8   :  { %1005 = vmatpush3.bf16.msra.mxu1 %v358_v37  ;;  %v911_v37 = vld [vmem:[%s1416_s9] ss:$0 sm:$0xff]  ;;  %s1223_s9 = smov [#allocation8]  }
 0x2d9   :  { %1010 = vmatprep.subr.bf16.mxu1 %v1097_v40 }
 0x2db   :  { %1007 = vmatmul.mubr.msk.bf16.vlgmr.msra.gmra.mrb[8].mxu1 %vm182_vm1, %v1357_v16 }
 0x2dc   :  { %1011 = vmatpush3.bf16.msra.mxu1 %v1097_v40 }
 0x2dd   :  { %1012 = vmatprep.subr.bf16.mxu1 %v1098_v41 }
 0x2e0   :  { %1013 = vmatpush3.bf16.msra.mxu1 %v1098_v41 }
 0x2e1   :  { %1014 = vmatprep.subr.bf16.mxu1 %v1099_v42 }
 0x2e4   :  { %1015 = vmatpush3.bf16.msra.mxu1 %v1099_v42 }
 0x2e5   :  { %1016 = vmatprep.subr.bf16.mxu1 %v1100_v43 }
 0x2e8   :  { %1017 = vmatpush3.bf16.msra.mxu1 %v1100_v43 }
 0x2e9   :  { %1018 = vmatprep.subr.bf16.mxu1 %v1101_v44 }
 0x2ec   :  { %1019 = vmatpush3.bf16.msra.mxu1 %v1101_v44 }
 0x2ed   :  { %1020 = vmatprep.subr.bf16.mxu1 %v1102_v45 }
 0x2f0   :  { %1021 = vmatpush3.bf16.msra.mxu1 %v1102_v45 }
 0x2f1   :  { %1022 = vmatprep.subr.bf16.mxu1 %v1103_v46 }
 0x2f4   :  { %1023 = vmatpush3.bf16.msra.mxu1 %v1103_v46 }
 0x2f5   :  { %1024 = vmatprep.subr.bf16.mxu1 %v1104_v47 }
 0x2f8   :  { %1025 = vmatpush3.bf16.msra.mxu1 %v1104_v47  ;;  %v822_v47 = vlaneseq }
 0x3ae   :  { %v1008_v49 = vpop.f32.mrb[8].mxu1 }
 0x3af   :  { %v409_v50 = vadd.f32 %v1008_v49, %v889_v48  ;;  %v400_v51 = vpop.f32.mrb[9].mxu1 }
 0x3b0   :  { %v401_v52 = vadd.f32 %v889_v48, %v400_v51  ;;  %v1009_v53 = vpop.f32.mrb[10].mxu1 }
 0x3b1   :  { %v412_v54 = vadd.f32 %v1009_v53, %v889_v48  ;;  %v403_v55 = vpop.f32.mrb[11].mxu1  ;;  %v417_v57 = vmax.f32 %v409_v50, 0.0 }
 0x3b2   :  { %v404_v56 = vadd.f32 %v889_v48, %v403_v55  ;;  %v415_v59 = vmax.f32 %v401_v52, 0.0  ;;  %v823_v48 = vand.u32 127, %v822_v47 }
 0x3b3   :  { %v418_v58 = vmax.f32 %v412_v54, 0.0 }
 0x3b4   :  { %v416_v60 = vmax.f32 %v404_v56, 0.0  ;;  %vm824_vm3 = vcmp.lt.s32.totalorder %v823_v48, 8 }
 0x3b5   :  { %v420_v61 = vpack.c.bf16 %v418_v58, %v417_v57 }
 0x3b6   :  { %v419_v62 = vpack.c.bf16 %v416_v60, %v415_v59 }
 0x3b8   :  { %1026 = vmatprep.mubr.bf16.mxu1 %v419_v62 }
 0x3b9   :  { %1027 = vmatmul.mubr.bf16.vlgmr.msra.gmra.mrb[12].mxu1 %v420_v61 }
 0x3ba   :  { %1062 = vmatprep.mubr.msk.bf16.mxu1 %vm182_vm1, %v1350_v3  ;;  %v1108_v3 = vld [vmem:[#allocation7 + $0x18] sm:$0xff]  }
 0x48c   :  { %v1028_v63 = vpop.f32.mrb[12].mxu1 }
 0x48d   :  { %v519_v0 = vpop.f32.mrb[13].mxu1 }
 0x48e   :  { %v1029_v1 = vpop.f32.mrb[14].mxu1 }
 0x48f   :  { %v535_v2 = vpack.c.bf16 %v1029_v1, %v1028_v63  ;;  %v522_v4 = vpop.f32.mrb[15].mxu1 }
 0x490   :  { %v534_v5 = vpack.c.bf16 %v522_v4, %v519_v0 }
 0x492   :  { %1030 = vmatprep.subr.bf16.mxu0 %v534_v5 }
 0x493   :  { %1031 = vmatpush3.bf16.msra.mxu0 %v534_v5 }
 0x494   :  { %1032 = vmatprep.subr.bf16.mxu0 %v535_v2 }
 0x497   :  { %1033 = vmatpush3.bf16.msra.mxu0 %v535_v2 }
 0x498   :  { %1038 = vmatprep.subr.bf16.mxu0 %v1105_v6 }
 0x49a   :  { %1035 = vmatmul.mubr.msk.bf16.vlgmr.msra.gmra.mrb[4].mxu0 %vm182_vm1, %v1357_v16 }
 0x49b   :  { %1039 = vmatpush3.bf16.msra.mxu0 %v1105_v6 }
 0x49c   :  { %1040 = vmatprep.subr.bf16.mxu0 %v1106_v7 }
 0x49f   :  { %1041 = vmatpush3.bf16.msra.mxu0 %v1106_v7 }
 0x4a0   :  { %1042 = vmatprep.subr.bf16.mxu0 %v1107_v8 }
 0x4a3   :  { %1043 = vmatpush3.bf16.msra.mxu0 %v1107_v8 }
 0x4a4   :  { %1044 = vmatprep.subr.bf16.mxu0 %v1108_v3 }
 0x4a7   :  { %1045 = vmatpush3.bf16.msra.mxu0 %v1108_v3 }
 0x4a8   :  { %1046 = vmatprep.subr.bf16.mxu0 %v1109_v9 }
 0x4ab   :  { %1047 = vmatpush3.bf16.msra.mxu0 %v1109_v9 }
 0x4ac   :  { %1048 = vmatprep.subr.bf16.mxu0 %v1110_v10 }
 0x4af   :  { %1049 = vmatpush3.bf16.msra.mxu0 %v1110_v10 }
 0x4b0   :  { %1050 = vmatprep.subr.bf16.mxu0 %v1111_v11 }
 0x4b3   :  { %1051 = vmatpush3.bf16.msra.mxu0 %v1111_v11 }
 0x4b4   :  { %1052 = vmatprep.subr.bf16.mxu0 %v1112_v12 }
 0x4b7   :  { %1053 = vmatpush3.bf16.msra.mxu0 %v1112_v12 }
 0x56d   :  { %v1036_v14 = vpop.f32.mrb[4].mxu0 }
 0x56e   :  { %v586_v15 = vadd.f32 %v1036_v14, %v900_v13  ;;  %v577_v17 = vpop.f32.mrb[5].mxu0 }
 0x56f   :  { %v578_v18 = vadd.f32 %v900_v13, %v577_v17  ;;  %v1037_v19 = vpop.f32.mrb[6].mxu0 }
 0x570   :  { %v589_v20 = vadd.f32 %v1037_v19, %v900_v13  ;;  %v580_v21 = vpop.f32.mrb[7].mxu0  ;;  %v594_v23 = vmax.f32 %v586_v15, 0.0 }
 0x571   :  { %v581_v22 = vadd.f32 %v900_v13, %v580_v21  ;;  %v592_v25 = vmax.f32 %v578_v18, 0.0 }
 0x572   :  { %v595_v24 = vmax.f32 %v589_v20, 0.0 }
 0x573   :  { %v593_v26 = vmax.f32 %v581_v22, 0.0 }
 0x574   :  { %v597_v27 = vpack.c.bf16 %v595_v24, %v594_v23 }
 0x575   :  { %v596_v28 = vpack.c.bf16 %v593_v26, %v592_v25 }
 0x577   :  { %1054 = vmatprep.mubr.bf16.mxu0 %v596_v28 }
 0x578   :  { %1055 = vmatmul.mubr.bf16.vlgmr.msra.gmra.mrb[8].mxu0 %v597_v27 }
 0x64b   :  { %v1056_v29 = vpop.f32.mrb[8].mxu0 }
 0x64c   :  { %v696_v30 = vpop.f32.mrb[9].mxu0 }
 0x64d   :  { %v1057_v31 = vpop.f32.mrb[10].mxu0 }
 0x64e   :  { %v712_v32 = vpack.c.bf16 %v1057_v31, %v1056_v29  ;;  %v699_v33 = vpop.f32.mrb[11].mxu0 }
 0x64f   :  { %v711_v34 = vpack.c.bf16 %v699_v33, %v696_v30 }
 0x651   :  { %1058 = vmatprep.subr.bf16.mxu1 %v711_v34 }
 0x652   :  { %1059 = vmatpush3.bf16.msra.mxu1 %v711_v34 }
 0x653   :  { %1060 = vmatprep.subr.bf16.mxu1 %v712_v32 }
 0x656   :  { %1061 = vmatpush3.bf16.msra.mxu1 %v712_v32 }
 0x657   :  { %1066 = vmatprep.subr.bf16.mxu1 %v1221_v35 }
 0x659   :  { %1063 = vmatmul.mubr.msk.bf16.vlgmr.msra.gmra.mrb[16].mxu1 %vm182_vm1, %v1357_v16  ;;  %v1113_v16 = vld [vmem:[%s1417_s10] sm:$0xff]   ;;  %s858_s10 = sshll.u32 %s1223_s9, 4  ;;  %s859_s10 = int_to_ptr.vmem [resolvable:$true] %s858_s10 }
 0x65a   :  { %1070 = vmatprep.mubr.msk.bf16.mxu1 %vm1222_vm2, %v1221_v35  ;;  %s1188_s28 = scalar_lea.vmem %s859_s10, 256  ;;  %p1193_p11 = scmp.lt.s32.totalorder %s859_s10, %s859_s10 }
 0x65b   :  { %p1189_p10 = scmp.ne.s32.totalorder %s859_s10, %s1188_s28  ;;  %p1194_p12 = scmp.lt.s32.totalorder %s1188_s28, %s1188_s28 }
 0x65d   :  { %p1195_p13 = por %p1194_p12, %p1193_p11 }
 0x65f   :  { %p1196_p0 = pnand %p1195_p13, %p1189_p10 }
 0x72c   :  { %v1064_v36 = vpop.f32.mrb[16].mxu1 }
 0x72d   :  { %v754_v38 = vpop.f32.mrb[17].mxu1  ;;  %v763_v40 = vadd.f32 %v1064_v36, %v911_v37 }
 0x72e   :  { %v1065_v39 = vpop.f32.mrb[18].mxu1  ;;  %v755_v43 = vadd.f32 %v911_v37, %v754_v38 }
 0x72f   :  { %v766_v41 = vadd.f32 %v1065_v39, %v911_v37  ;;  %v757_v42 = vpop.f32.mrb[19].mxu1 }
 0x730   :  { %v758_v44 = vadd.f32 %v911_v37, %v757_v42 }
 0x731   :  { %v770_v45 = vpack.c.bf16 %v766_v41, %v763_v40 }
 0x732   :  { %v769_v46 = vpack.c.bf16 %v758_v44, %v755_v43 }
 0x734   :  { %1067 = vmatpush3.bf16.msra.mxu1 %v769_v46 }
 0x735   :  { %1068 = vmatprep.subr.bf16.mxu1 %v1221_v35 }
 0x738   :  { %1069 = vmatpush3.bf16.msra.mxu1 %v770_v45 }
 0x73b   :  { %1071 = vmatmul.mubr.msk.bf16.vlgmr.msra.gmra.mrb[20].mxu1 %vm182_vm1, %v1113_v16 }
 0x80e   :  { %v815_v49 = vpop.f32.mrb[20].mxu1 }
 0x80f   :  { %v1072_v50 = vpop.f32.mrb[21].mxu1  ;;  %v825_v51 = vsel %vm824_vm3, %v815_v49, -inf }
 0x810   :  { %827 = vmax.xlane.f32.xlu0 %v825_v51  ;;  %v818_v52 = vpop.f32.mrb[22].mxu1 }
 0x811   :  { %v1073_v53 = vpop.f32.mrb[23].mxu1  ;;  %v826_v54 = vsel %vm824_vm3, %v818_v52, -inf }
 0x814   :  { %829 = vmax.xlane.f32.xlu0 %v826_v54 }
 0x89d   :  { %v828_v55 = vpop.xlane.xlu0 %827 }
 0x89e   :  { %v831_v56 = vsub.f32 %v815_v49, %v828_v55 }
 0x8a0   :  { %v833_v57 = vmul.f32 1.442695, %v831_v56 }
 0x8a1   :  { %v830_v58 = vpop.xlane.xlu0 %829 }
 0x8a2   :  { %1114 = vpow2.f32 %v833_v57  ;;  %v832_v59 = vsub.f32 %v818_v52, %v830_v58 }
 0x8a4   :  { %v835_v60 = vmul.f32 1.442695, %v832_v59 }
 0x8a6   :  { %1116 = vpow2.f32 %v835_v60 }
 0x8ac   :  { %v1115_v61 = vpop.eup %1114 }
 0x8ad   :  { %v837_v62 = vsel %vm824_vm3, %v1115_v61, 0.0 }
 0x8ae   :  { %839 = vadd.xlane.f32.xlu1 %v837_v62 }
 0x8b0   :  { %v1117_v63 = vpop.eup %1116 }
 0x8b1   :  { %v838_v0 = vsel %vm824_vm3, %v1117_v63, 0.0 }
 0x8b2   :  { %841 = vadd.xlane.f32.xlu1 %v838_v0 }
 0x93b   :  { %v840_v1 = vpop.xlane.xlu1 %839 }
 0x93c   :  { %1118 = vlog2.f32 %v840_v1 }
 0x93f   :  { %v842_v2 = vpop.xlane.xlu1 %841 }
 0x940   :  { %1120 = vlog2.f32 %v842_v2 }
 0x946   :  { %v1119_v4 = vpop.eup %1118 }
 0x947   :  { %v844_v5 = vmul.f32 0.6931472, %v1119_v4 }
 0x949   :  { %v847_v6 = vsub.f32 %v831_v56, %v844_v5 }
 0x94a   :  { %v1121_v7 = vpop.eup %1120 }
 0x94b   :  { %v849_v8 = vsel %vm824_vm3, %v847_v6, 0.0  ;;  %v846_v3 = vmul.f32 0.6931472, %v1121_v7 }
 0x94c   :  { %851 = vst [vmem:[#allocation8] sm:$0xff] %v849_v8 }
 0x94d   :  { %v848_v9 = vsub.f32 %v832_v59, %v846_v3 }
 0x94f   :  { %v850_v10 = vsel %vm824_vm3, %v848_v9, 0.0 }
 0x950   :  { %852 = vst [vmem:[#allocation8 + $0x8] sm:$0xff] %v850_v10 }
 0x951   :  { %1199 = shalt.err (!%p1196_p0)
}
 0x952   :  { %s1200_s14 = scalar_lea.hbm %s1418_s11, 256 }
 0x953   :  { %p1201_p1 = scmp.ne.s32.totalorder %s1418_s11, %s1200_s14  ;;  %p1204_p2 = scmp.lt.u32.totalorder %s1200_s14, %s1418_s11 }
 0x955   :  { %p1206_p3 = pnand %p1204_p2, %p1201_p1 }
 0x957   :  { %1209 = shalt.err (!%p1206_p3)
}
 0x958   :  { %s1224_s17 = smov 128   ;;  %s1225_s19 = smov 8  }
 0x959   :  { %864 = dma.vmem_to_hbm [thread:$0]  %s859_s10, 256, %s1418_s11, [#allocation4], %s1224_s17, %s1224_s17, %s1225_s19  }
 0x95a   :  { %1214 = dma.done.wait [#allocation4], 256  }
 0x95b   :  { %1215 = vsyncadd [#allocation4], 4294967040 }
 0x95c   :  { %868 = vsyncpa [#allocation3], 1 }
 0x95d   :  { %869 = vsyncpa [#allocation6], 1 }
 0x95e   :  { %870 = vsyncpa [#allocation4], 1 }

</bundles_post_ra>
